<compile_context>
chip_gen: v5e
topology: v5e:2x2
jax: 0.10.0
libtpu: 0.0.40
codegen_flags: <defaults>
</compile_context>

<pallas_src>
import functools

import jax
import jax.numpy as jnp
from jax.experimental import pallas as pl
from jax.experimental.pallas import tpu as pltpu

LANE = 128                     # TPU lane width
DEFAULT_BATCH_TILE = 65536     # upper cap on rows per grid step
VMEM_TILE_BUDGET = 28 << 20    # bytes used to derive the batch tile (conservative)
VMEM_LIMIT_BYTES = 48 << 20    # scoped VMEM limit (fits v5e/v6e/v7x physical VMEM)


def _round_up(x, m):
    return ((x + m - 1) // m) * m


def _tiling_plan(B, half, hidden_widths, batch_tile=DEFAULT_BATCH_TILE,
                 vmem_budget=VMEM_TILE_BUDGET):
    """Pick (batch_tile, padded_batch, num_tiles).

    Per-batch-column VMEM estimate: double-buffered bf16 activation inputs
    (2 arrays x 2 bufs x half x 2B), double-buffered f32 output (2 x 4B), and
    f32 + bf16 intermediates for every hidden width (conservative sum).
    """
    B128 = _round_up(max(B, 1), LANE)
    per_col = 8 * half + 8 + 6 * sum(hidden_widths)
    tb_vmem = max(LANE, (vmem_budget // per_col) // LANE * LANE)
    tb_cap = min(_round_up(batch_tile, LANE), tb_vmem)

    if B128 <= tb_cap:
        # Fits in one tile; still split in two (even) when the batch spans at
        # least two lane-tiles so a v7x megacore can use both TensorCores.
        num_tiles = 2 if B128 >= 2 * LANE else 1
    else:
        num_tiles = -(-B128 // tb_cap)
        if num_tiles % 2:
            num_tiles += 1            # even tile count: no idle TC at the tail

    TB = _round_up(-(-B128 // num_tiles), LANE)
    B_pad = TB * num_tiles
    return TB, B_pad, num_tiles


def _mlp_kernel(num_extra_linears, *refs):
    """refs = [u, i, W1_u, W1_i, b1, (W_l, b_l)*num_extra_linears, wp, bp, out]."""
    u_ref, i_ref = refs[0], refs[1]
    out_ref = refs[-1]
    p = refs[2:-1]

    # Layer 1, concat fused away:  W1 @ [u; i] = W1_u @ u + W1_i @ i   (bf16 x bf16 -> f32)
    h = (jnp.dot(p[0][...], u_ref[...], preferred_element_type=jnp.float32)
         + jnp.dot(p[1][...], i_ref[...], preferred_element_type=jnp.float32)
         + p[2][...])
    h = jnp.maximum(h, 0.0)                        # ReLU (f32)

    idx = 3
    for _ in range(num_extra_linears):             # static, fully unrolled
        w = p[idx][...]                            # bf16 (out, in)
        b = p[idx + 1][...]                        # f32  (out, 1)
        idx += 2
        h = jnp.dot(w, h.astype(w.dtype), preferred_element_type=jnp.float32) + b
        h = jnp.maximum(h, 0.0)

    # Predict layer (out_features == 1): VPU multiply + sublane reduce instead
    # of an N=1 MXU matmul.
    wp = p[idx][...].astype(jnp.float32)           # (H_last, 1)
    bp = p[idx + 1][...]                           # (1, 1) f32
    logits = jnp.sum(h * wp, axis=0, keepdims=True) + bp      # (1, TB) lane-dense
    out_ref[...] = jax.nn.sigmoid(logits) * 5.0


def mlp_pallas_forward(u_emb_t, i_emb_t, params, *, TB):
    """u_emb_t / i_emb_t: (half, B_pad) bf16, B_pad % TB == 0. Returns (B_pad,) f32."""
    half, B_pad = u_emb_t.shape
    assert B_pad % TB == 0 and TB % LANE == 0

    flat = [params["w1_user"], params["w1_item"], params["b1"]]
    for w, b in params["hidden"]:
        flat += [w, b]
    flat += [params["predict"][0], params["predict"][1]]

    num_tiles = B_pad // TB

    def act_spec(a):
        # Batch (lane) axis tiled over the grid; feature axis taken whole.
        return pl.BlockSpec((a.shape[0], TB), lambda i: (0, i))

    def resident_spec(a):
        # Whole-array block, constant index_map -> stays resident in VMEM.
        return pl.BlockSpec(a.shape, lambda i: (0, 0))

    kernel = functools.partial(_mlp_kernel, len(params["hidden"]))
    out = pl.pallas_call(
        kernel,
        out_shape=jax.ShapeDtypeStruct((1, B_pad), jnp.float32),
        grid=(num_tiles,),
        in_specs=[act_spec(u_emb_t), act_spec(i_emb_t)]
                 + [resident_spec(a) for a in flat],
        out_specs=pl.BlockSpec((1, TB), lambda i: (0, i)),
        compiler_params=pltpu.CompilerParams(
            dimension_semantics=("parallel",),      # shard batch tiles across TCs (v7x)
            vmem_limit_bytes=VMEM_LIMIT_BYTES),
    )(u_emb_t, i_emb_t, *flat)
    return out.reshape(-1)                          # mirrors .view(-1)


# ----------------------- parameter construction (deterministic) -------------


def init_params(key, n_users, n_items, hidden_layers, for_NeuMF=False):
    half = hidden_layers[0] // 2
    k_ue, k_ie, key = jax.random.split(key, 3)
    params = {
        # Embedding tables stored feature-major (half, n) and bf16 so the
        # gathered activations land directly in the kernel's layout/dtype.
        "user_embed_t": (0.01 * jax.random.normal(
            k_ue, (half, n_users), jnp.float32)).astype(jnp.bfloat16),
        "item_embed_t": (0.01 * jax.random.normal(
            k_ie, (half, n_items), jnp.float32)).astype(jnp.bfloat16),
        "hidden": [],
    }
    # hidden linears: torch layout W=(out,in); kaiming_uniform (relu) weights,
    # bias ~ U(-1/sqrt(fan_in), 1/sqrt(fan_in)) (torch Linear default, untouched
    # by _init_weight). First-layer weight pre-split across the concat boundary.
    for i in range(len(hidden_layers) - 1):
        fan_in, fan_out = hidden_layers[i], hidden_layers[i + 1]
        kw, kb, key = jax.random.split(key, 3)
        bound_w = (6.0 / fan_in) ** 0.5            # sqrt(2) * sqrt(3/fan_in)
        w = jax.random.uniform(kw, (fan_out, fan_in), jnp.float32, -bound_w, bound_w)
        bound_b = 1.0 / (fan_in ** 0.5)
        b = jax.random.uniform(kb, (fan_out, 1), jnp.float32, -bound_b, bound_b)
        if i == 0:
            params["w1_user"] = w[:, :half].astype(jnp.bfloat16)
            params["w1_item"] = w[:, half:].astype(jnp.bfloat16)
            params["b1"] = b
        else:
            params["hidden"].append((w.astype(jnp.bfloat16), b))
    if not for_NeuMF:
        fan_in, fan_out = hidden_layers[-1], 1
        kw, kb, key = jax.random.split(key, 3)
        bound_w = (6.0 / (fan_in + fan_out)) ** 0.5    # xavier_uniform, gain(sigmoid)=1
        wp = jax.random.uniform(kw, (fan_in, 1), jnp.float32,
                                -bound_w, bound_w).astype(jnp.bfloat16)
        bound_b = 1.0 / (fan_in ** 0.5)
        bp = jax.random.uniform(kb, (1, 1), jnp.float32, -bound_b, bound_b)
        params["predict"] = (wp, bp)
    return params


def mlp_forward(params, users, items, *, batch_tile=DEFAULT_BATCH_TILE):
    # users/items are 1-based ids, as in the PyTorch module.
    # TODO(synk): for_NeuMF=True branch (return pre-predict features) not wired up.
    B = users.shape[0]
    half = params["user_embed_t"].shape[0]
    hidden_widths = [params["b1"].shape[0]] + [b.shape[0] for _, b in params["hidden"]]
    TB, B_pad, _ = _tiling_plan(B, half, hidden_widths, batch_tile)

    # Pad the (cheap) index vectors so the gather writes tile-aligned, bf16
    # activation streams directly -- no post-hoc copy/convert of the big arrays.
    u_idx = jnp.pad(users - 1, (0, B_pad - B))
    i_idx = jnp.pad(items - 1, (0, B_pad - B))
    u_emb_t = jnp.take(params["user_embed_t"], u_idx, axis=1)
    i_emb_t = jnp.take(params["item_embed_t"], i_idx, axis=1)

    out = mlp_pallas_forward(u_emb_t, i_emb_t, params, TB=TB)
    return out[:B]


if __name__ == "__main__":
    key = jax.random.PRNGKey(0)
    n_users, n_items = 10, 12
    hidden_layers = [32, 16, 8]
    batch = 8

    k_params, k_u, k_i = jax.random.split(key, 3)
    params = init_params(k_params, n_users, n_items, hidden_layers)

    users = jax.random.randint(k_u, (batch,), 1, n_users + 1, dtype=jnp.int32)
    items = jax.random.randint(k_i, (batch,), 1, n_items + 1, dtype=jnp.int32)

    out = mlp_forward(params, users, items)
    out = jax.block_until_ready(out)
    assert out.shape == (batch,)
    assert bool(jnp.all((out >= 0.0) & (out <= 5.0)))
    print("KERNEL_OK")
</pallas_src>

<mosaic_0001>
module attributes {stable_mosaic.version = 11 : i64} {
  func.func @_mlp_kernel(%arg0: i32, %arg1: memref<16x128xbf16, #tpu.memory_space<vmem>>, %arg2: memref<16x128xbf16, #tpu.memory_space<vmem>>, %arg3: memref<16x16xbf16, #tpu.memory_space<vmem>>, %arg4: memref<16x16xbf16, #tpu.memory_space<vmem>>, %arg5: memref<16x1xf32, #tpu.memory_space<vmem>>, %arg6: memref<8x16xbf16, #tpu.memory_space<vmem>>, %arg7: memref<8x1xf32, #tpu.memory_space<vmem>>, %arg8: memref<8x1xbf16, #tpu.memory_space<vmem>>, %arg9: memref<1x1xf32, #tpu.memory_space<vmem>>, %arg10: memref<1x128xf32, #tpu.memory_space<vmem>>) attributes {dimension_semantics = [#tpu.dimension_semantics<parallel>], iteration_bounds = array<i64: 1>, scalar_prefetch = 0 : i64, scratch_operands = 0 : i64, tpu.core_type = #tpu.core_type<tc>, window_params = [{transform_indices = @transform_0, window_bounds = array<i64: 16, 128>}, {transform_indices = @transform_1, window_bounds = array<i64: 16, 128>}, {pipeline_mode = #tpu.pipeline_mode<synchronous>, transform_indices = @transform_2, window_bounds = array<i64: 16, 16>}, {pipeline_mode = #tpu.pipeline_mode<synchronous>, transform_indices = @transform_3, window_bounds = array<i64: 16, 16>}, {pipeline_mode = #tpu.pipeline_mode<synchronous>, transform_indices = @transform_4, window_bounds = array<i64: 16, 1>}, {pipeline_mode = #tpu.pipeline_mode<synchronous>, transform_indices = @transform_5, window_bounds = array<i64: 8, 16>}, {pipeline_mode = #tpu.pipeline_mode<synchronous>, transform_indices = @transform_6, window_bounds = array<i64: 8, 1>}, {pipeline_mode = #tpu.pipeline_mode<synchronous>, transform_indices = @transform_7, window_bounds = array<i64: 8, 1>}, {pipeline_mode = #tpu.pipeline_mode<synchronous>, transform_indices = @transform_8, window_bounds = array<i64: 1, 1>}, {transform_indices = @transform_9, window_bounds = array<i64: 1, 128>}]} {
    %c0 = arith.constant 0 : index
    %c0_0 = arith.constant 0 : index
    %0 = vector.load %arg3[%c0, %c0_0] : memref<16x16xbf16, #tpu.memory_space<vmem>>, vector<16x16xbf16>
    %c0_1 = arith.constant 0 : index
    %c0_2 = arith.constant 0 : index
    %1 = vector.load %arg1[%c0_1, %c0_2] : memref<16x128xbf16, #tpu.memory_space<vmem>>, vector<16x128xbf16>
    %cst = arith.constant dense<0.000000e+00> : vector<16x128xf32>
    %2 = tpu.matmul %0, %1, %cst {dimension_numbers = #tpu.dot_dimension_numbers<[1], [0], [0], [1], [0, 0, 1, 1], [], []>} : vector<16x16xbf16>, vector<16x128xbf16>, vector<16x128xf32> -> vector<16x128xf32>
    %c0_3 = arith.constant 0 : index
    %c0_4 = arith.constant 0 : index
    %3 = vector.load %arg4[%c0_3, %c0_4] : memref<16x16xbf16, #tpu.memory_space<vmem>>, vector<16x16xbf16>
    %c0_5 = arith.constant 0 : index
    %c0_6 = arith.constant 0 : index
    %4 = vector.load %arg2[%c0_5, %c0_6] : memref<16x128xbf16, #tpu.memory_space<vmem>>, vector<16x128xbf16>
    %cst_7 = arith.constant dense<0.000000e+00> : vector<16x128xf32>
    %5 = tpu.matmul %3, %4, %cst_7 {dimension_numbers = #tpu.dot_dimension_numbers<[1], [0], [0], [1], [0, 0, 1, 1], [], []>} : vector<16x16xbf16>, vector<16x128xbf16>, vector<16x128xf32> -> vector<16x128xf32>
    %6 = arith.addf %2, %5 : vector<16x128xf32>
    %c0_8 = arith.constant 0 : index
    %c0_9 = arith.constant 0 : index
    %7 = vector.load %arg5[%c0_8, %c0_9] : memref<16x1xf32, #tpu.memory_space<vmem>>, vector<16x1xf32>
    %8 = vector.broadcast %7 : vector<16x1xf32> to vector<16x128xf32>
    %9 = arith.addf %6, %8 : vector<16x128xf32>
    %cst_10 = arith.constant 0.000000e+00 : f32
    %10 = vector.broadcast %cst_10 : f32 to vector<16x128xf32>
    %11 = arith.maximumf %9, %10 : vector<16x128xf32>
    %c0_11 = arith.constant 0 : index
    %c0_12 = arith.constant 0 : index
    %12 = vector.load %arg6[%c0_11, %c0_12] : memref<8x16xbf16, #tpu.memory_space<vmem>>, vector<8x16xbf16>
    %c0_13 = arith.constant 0 : index
    %c0_14 = arith.constant 0 : index
    %13 = vector.load %arg7[%c0_13, %c0_14] : memref<8x1xf32, #tpu.memory_space<vmem>>, vector<8x1xf32>
    %14 = arith.truncf %11 : vector<16x128xf32> to vector<16x128xbf16>
    %cst_15 = arith.constant dense<0.000000e+00> : vector<8x128xf32>
    %15 = tpu.matmul %12, %14, %cst_15 {dimension_numbers = #tpu.dot_dimension_numbers<[1], [0], [0], [1], [0, 0, 1, 1], [], []>} : vector<8x16xbf16>, vector<16x128xbf16>, vector<8x128xf32> -> vector<8x128xf32>
    %16 = vector.broadcast %13 : vector<8x1xf32> to vector<8x128xf32>
    %17 = arith.addf %15, %16 : vector<8x128xf32>
    %cst_16 = arith.constant 0.000000e+00 : f32
    %18 = vector.broadcast %cst_16 : f32 to vector<8x128xf32>
    %19 = arith.maximumf %17, %18 : vector<8x128xf32>
    %c0_17 = arith.constant 0 : index
    %c0_18 = arith.constant 0 : index
    %20 = vector.load %arg8[%c0_17, %c0_18] : memref<8x1xbf16, #tpu.memory_space<vmem>>, vector<8x1xbf16>
    %21 = arith.extf %20 : vector<8x1xbf16> to vector<8x1xf32>
    %c0_19 = arith.constant 0 : index
    %c0_20 = arith.constant 0 : index
    %22 = vector.load %arg9[%c0_19, %c0_20] : memref<1x1xf32, #tpu.memory_space<vmem>>, vector<1x1xf32>
    %23 = vector.broadcast %21 : vector<8x1xf32> to vector<8x128xf32>
    %24 = arith.mulf %19, %23 : vector<8x128xf32>
    %cst_21 = arith.constant dense<0.000000e+00> : vector<128xf32>
    %25 = vector.multi_reduction <add>, %24, %cst_21 [0] : vector<8x128xf32> to vector<128xf32>
    %26 = vector.shape_cast %25 : vector<128xf32> to vector<1x128xf32>
    %27 = vector.broadcast %22 : vector<1x1xf32> to vector<1x128xf32>
    %28 = arith.addf %26, %27 : vector<1x128xf32>
    %29 = arith.negf %28 : vector<1x128xf32>
    %30 = math.exp %29 : vector<1x128xf32>
    %cst_22 = arith.constant 1.000000e+00 : f32
    %31 = vector.broadcast %cst_22 : f32 to vector<1x128xf32>
    %32 = arith.addf %31, %30 : vector<1x128xf32>
    %33 = arith.divf %31, %32 : vector<1x128xf32>
    %cst_23 = arith.constant 5.000000e+00 : f32
    %34 = vector.broadcast %cst_23 : f32 to vector<1x128xf32>
    %35 = arith.mulf %33, %34 : vector<1x128xf32>
    %c0_24 = arith.constant 0 : index
    %c0_25 = arith.constant 0 : index
    %36 = vector.load %arg10[%c0_24, %c0_25] : memref<1x128xf32, #tpu.memory_space<vmem>>, vector<1x128xf32>
    tpu.vector_store %arg10[%c0_24, %c0_25], %35 {strides = array<i32>} : memref<1x128xf32, #tpu.memory_space<vmem>>, vector<1x128xf32>,
    return
  }
  func.func @transform_0(%arg0: i32) -> (i32, i32) {
    %c0_i32 = arith.constant 0 : i32
    %c0_i32_0 = arith.constant 0 : i32
    return %c0_i32, %arg0 : i32, i32
  }
  func.func @transform_1(%arg0: i32) -> (i32, i32) {
    %c0_i32 = arith.constant 0 : i32
    %c0_i32_0 = arith.constant 0 : i32
    return %c0_i32, %arg0 : i32, i32
  }
  func.func @transform_2(%arg0: i32) -> (i32, i32) {
    %c0_i32 = arith.constant 0 : i32
    %c0_i32_0 = arith.constant 0 : i32
    %c0_i32_1 = arith.constant 0 : i32
    return %c0_i32, %c0_i32_0 : i32, i32
  }
  func.func @transform_3(%arg0: i32) -> (i32, i32) {
    %c0_i32 = arith.constant 0 : i32
    %c0_i32_0 = arith.constant 0 : i32
    %c0_i32_1 = arith.constant 0 : i32
    return %c0_i32, %c0_i32_0 : i32, i32
  }
  func.func @transform_4(%arg0: i32) -> (i32, i32) {
    %c0_i32 = arith.constant 0 : i32
    %c0_i32_0 = arith.constant 0 : i32
    %c0_i32_1 = arith.constant 0 : i32
    return %c0_i32, %c0_i32_0 : i32, i32
  }
  func.func @transform_5(%arg0: i32) -> (i32, i32) {
    %c0_i32 = arith.constant 0 : i32
    %c0_i32_0 = arith.constant 0 : i32
    %c0_i32_1 = arith.constant 0 : i32
    return %c0_i32, %c0_i32_0 : i32, i32
  }
  func.func @transform_6(%arg0: i32) -> (i32, i32) {
    %c0_i32 = arith.constant 0 : i32
    %c0_i32_0 = arith.constant 0 : i32
    %c0_i32_1 = arith.constant 0 : i32
    return %c0_i32, %c0_i32_0 : i32, i32
  }
  func.func @transform_7(%arg0: i32) -> (i32, i32) {
    %c0_i32 = arith.constant 0 : i32
    %c0_i32_0 = arith.constant 0 : i32
    %c0_i32_1 = arith.constant 0 : i32
    return %c0_i32, %c0_i32_0 : i32, i32
  }
  func.func @transform_8(%arg0: i32) -> (i32, i32) {
    %c0_i32 = arith.constant 0 : i32
    %c0_i32_0 = arith.constant 0 : i32
    %c0_i32_1 = arith.constant 0 : i32
    return %c0_i32, %c0_i32_0 : i32, i32
  }
  func.func @transform_9(%arg0: i32) -> (i32, i32) {
    %c0_i32 = arith.constant 0 : i32
    %c0_i32_0 = arith.constant 0 : i32
    return %c0_i32, %arg0 : i32, i32
  }
}

</mosaic_0001>

<bundles_post_ra>
// kernel: tpu_custom_call.1
= control target key start
LH: loop header
LB: loop body
LE: loop exit
PB: predicated region body
PF: predicated region fallthrough
CT: control target
= control target key end

     0   :  { %s397_s0 = inlined_call_operand.vmem [shape: bf16[16,128], index: 0, kind: input, shape index: {}]   ;;  %s398_s1 = inlined_call_operand.vmem [shape: bf16[16,128], index: 1, kind: input, shape index: {}]   ;;  %s399_s2 = inlined_call_operand.vmem [shape: bf16[16,16], index: 2, kind: input, shape index: {}]   ;;  %s400_s3 = inlined_call_operand.hbm [shape: bf16[16,16], index: 3, kind: input, shape index: {}]   ;;  %s401_s4 = inlined_call_operand.vmem [shape: f32[16,1], index: 4, kind: input, shape index: {}]   ;;  %s402_s5 = inlined_call_operand.vmem [shape: bf16[8,16], index: 5, kind: input, shape index: {}]   ;;  %s403_s6 = inlined_call_operand.vmem [shape: f32[8,1], index: 6, kind: input, shape index: {}]   ;;  %s404_s7 = inlined_call_operand.vmem [shape: bf16[8,1], index: 7, kind: input, shape index: {}]   ;;  %s405_s8 = inlined_call_operand.<no memory space> [shape: f32[1,1], index: 8, kind: input, shape index: {}]   ;;  %s406_s9 = inlined_call_operand.hbm [shape: f32[1,128], index: 9, kind: output, shape index: {}]  }
   0x1   :  { %v14_v0 = vstv %s405_s8 }
   0x2   :  { %15 = vst [vmem:[#allocation2] sm:$0x1] %v14_v0 }
   0x3   :  { %16 = vsyncpa [#allocation4], 0 }
   0x4   :  { %17 = vsyncpa [#allocation5], 0  ;;  %s28_s13 = sshll.u32 %s400_s3, 4  ;;  %s306_s14 = smov [#allocation3]   ;;  %s29_s13 = int_to_ptr.hbm [resolvable:$true] %s28_s13 }
   0x5   :  { %s30_s15 = sshll.u32 %s306_s14, 4  ;;  %s307_s16 = smov 64   ;;  %s31_s15 = int_to_ptr.vmem [resolvable:$true] %s30_s15 }
   0x6   :  { %s308_s17 = smov 4  }
   0x7   :  { %36 = dma.hbm_to_vmem [thread:$0]  %s29_s13, 128, %s31_s15, [#allocation4], %s307_s16, %s307_s16, %s308_s17  }
   0x8   :  { %302 = dma.done.wait [#allocation4], 128  }
   0x9   :  { %303 = vsyncadd [#allocation4], 4294967168  ;;  %v309_v1 = vmov 0   ;;  %v241_v2 = vld [vmem:[%s398_s1] sm:$0xff]  ;;  %vm71_vm0 = vcmask 130048   ;;  %v118_v7 = vld [vmem:[%s401_s4 + $0x8] sm:$0xff] }
   0xa   :  { %247 = vset.pattern.permute.xlu0 %v309_v1  ;;  %248 = vset.pattern.permute.xlu1 %v309_v1  ;;  %v239_v3 = vld [vmem:[%s397_s0] sm:$0xff]  ;;  %s208_s29 = sshll.u32 %s406_s9, 4  ;;  %s209_s29 = int_to_ptr.hbm [resolvable:$true] %s208_s29 }
   0xb   :  { %249 = vset.pattern.permute.xlu2 %v309_v1  ;;  %v240_v4 = vld [vmem:[#allocation3] sm:$0xff]  ;;  %82 = vmatpush.bf16.msra.mxu0 %v241_v2  ;;  %v160_v9 = vld [vmem:[#allocation2] sm:$0x1] }
   0xc   :  { %v238_v5 = vld [vmem:[%s399_s2] sm:$0xff]  ;;  %110 = vmatpush.bf16.msra.mxu1 %v239_v3  ;;  %175 = vperm.xlu2 %249, %v160_v9  }
   0xd   :  { %v117_v6 = vld [vmem:[%s401_s4] sm:$0xff] }
   0xe   :  { %121 = vperm.xlu0 %247, %v117_v6   ;;  %226 = vmatmul.msk.bf16.vlgmr.msra.gmra.mxu0 %vm71_vm0, %v240_v4  ;;  %v134_v8 = vld [vmem:[%s403_s6] sm:$0xff] }
   0xf   :  { %235 = vmatmul.msk.bf16.vlgmr.msra.gmra.mxu1 %vm71_vm0, %v238_v5  ;;  %138 = vperm.xlu1 %248, %v134_v8   ;;  %v158_v10 = vld [vmem:[%s404_s7] sm:$0xf] }
  0x10   :  { %v159_v11 = vunpack.c.l.bf16 %v158_v10  ;;  %v133_v25 = vld [vmem:[%s402_s5] sm:$0xf]  ;;  %s310_s5 = smov [#allocation6]  }
  0x11   :  { %s206_s7 = sshll.u32 %s310_s5, 4  ;;  %s207_s7 = int_to_ptr.vmem [resolvable:$true] %s206_s7 }
  0x16   :  { %126 = vperm.xlu0 %247, %v118_v7  }
  0x17   :  { %163 = vperm.xlu1 %248, %v159_v11  }
  0x66   :  { %v176_v36 = vpop.permute.xlu2 %175 }
  0x67   :  { %v178_v39 = vperm.slane %v176_v36, 0 }
  0x80   :  { %v122_v12 = vpop.permute.xlu0 %121 }
  0x81   :  { %v139_v26 = vpop.permute.xlu1 %138 }
  0x88   :  { %v127_v20 = vpop.permute.xlu0 %126 }
  0x89   :  { %v164_v30 = vpop.permute.xlu1 %163 }
  0x8b   :  { %v84_v13 = vpop.f32.mrf.mxu0 }
  0x8c   :  { %v112_v14 = vpop.f32.mrf.mxu1 }
  0x8d   :  { %v113_v15 = vadd.f32 %v112_v14, %v84_v13 }
  0x8f   :  { %v129_v19 = vadd.f32 %v122_v12, %v113_v15 }
  0x91   :  { %v131_v22 = vmax.f32 %v129_v19, 0.0 }
  0x93   :  { %v86_v16 = vpop.f32.mrf.mxu0 }
  0x94   :  { %v114_v17 = vpop.f32.mrf.mxu1 }
  0x95   :  { %v115_v18 = vadd.f32 %v114_v17, %v86_v16 }
  0x97   :  { %v130_v21 = vadd.f32 %v127_v20, %v115_v18 }
  0x99   :  { %v132_v23 = vmax.f32 %v130_v21, 0.0 }
  0x9b   :  { %v135_v24 = vpack.c.bf16 %v132_v23, %v131_v22 }
  0x9d   :  { %151 = vmatpush.bf16.msra.mxu2 %v135_v24 }
  0xa0   :  { %236 = vmatmul.msk.bf16.vlgmr.msra.gmra.mxu2 %vm71_vm0, %v133_v25 }
 0x123   :  { %v153_v27 = vpop.f32.mrf.mxu2 }
 0x124   :  { %v154_v28 = vadd.f32 %v153_v27, %v139_v26 }
 0x126   :  { %v157_v29 = vmax.f32 %v154_v28, 0.0 }
 0x128   :  { %v166_v31 = vmul.f32 %v164_v30, %v157_v29 }
 0x12a   :  { %v167_v32 = vrot.slane %v166_v31, 4 }
 0x12b   :  { %v155_v33 = vpop.f32.mrf.mxu2 }
 0x12c   :  { %v168_v34 = vadd.f32 %v167_v32, %v166_v31 }
 0x12e   :  { %v169_v35 = vrot.slane %v168_v34, 2 }
 0x130   :  { %v170_v37 = vadd.f32 %v169_v35, %v168_v34 }
 0x132   :  { %v171_v38 = vrot.slane %v170_v37, 1 }
 0x134   :  { %v172_v40 = vadd.f32 %v171_v38, %v170_v37 }
 0x136   :  { %v179_v41 = vadd.f32 %v178_v39, %v172_v40 }
 0x138   :  { %v237_v42 = vmul.f32 -1.442695, %v179_v41 }
 0x13a   :  { %250 = vpow2.f32 %v237_v42 }
 0x140   :  { %v251_v43 = vpop.eup %250 }
 0x141   :  { %v183_v44 = vadd.f32 1.0, %v251_v43 }
 0x143   :  { %252 = vrcp.f32 %v183_v44  ;;  %v195_v48 = vand.u32 2147483648, %v183_v44  ;;  %v193_v50 = vand.u32 2147483647, %v183_v44  ;;  %vm189_vm2 = vweird.f32 %v183_v44 }
 0x145   :  { %v196_v52 = vor.u32 1.1754944e-38, %v195_v48  ;;  %vm194_vm4 = vcmp.eq.f32.partialorder %v193_v50, 8.507059e+37 }
 0x149   :  { %v253_v45 = vpop.eup %252 }
 0x14a   :  { %v185_v46 = vmul.f32 %v253_v45, %v183_v44  ;;  %vm190_vm1 = vweird.f32 %v253_v45 }
 0x14b   :  { %vm191_vm3 = vmor %vm189_vm2, %vm190_vm1 }
 0x14c   :  { %v186_v47 = vsub.f32 1.0, %v185_v46 }
 0x14e   :  { %v187_v49 = vmul.f32 %v253_v45, %v186_v47 }
 0x150   :  { %v188_v51 = vadd.f32 %v253_v45, %v187_v49 }
 0x152   :  { %v192_v53 = vsel %vm191_vm3, %v253_v45, %v188_v51 }
 0x153   :  { %v197_v54 = vsel %vm194_vm4, %v196_v52, %v192_v53 }
 0x154   :  { %v199_v55 = vmul.f32 5.0, %v197_v54 }
 0x156   :  { %200 = vst [vmem:[#allocation6] sm:$0x1] %v199_v55 }
 0x157   :  { %211 = dma.vmem_to_hbm [thread:$0]  %s207_s7, 16, %s209_s29, [#allocation5]  }
 0x158   :  { %304 = dma.done.wait [#allocation5], 16  }
 0x159   :  { %305 = vsyncadd [#allocation5], 4294967280 }
 0x15a   :  { %216 = vsyncpa [#allocation4], 1 }
 0x15b   :  { %217 = vsyncpa [#allocation5], 1 }

</bundles_post_ra>
